<compile_context>
chip_gen: v6e
topology: v6e:2x2x1
jax: 0.10.0
libtpu: 0.0.40
codegen_flags: <defaults>
</compile_context>

<pallas_src>
import jax
import jax.numpy as jnp
from jax.experimental import pallas as pl
from jax.experimental.pallas import tpu as pltpu


# ----------------------------------------------------------------------------
# Pallas kernel: conv1x1(+BN), conv3x3(+BN)+ReLU, conv3x3(+BN), add, ReLU
# ----------------------------------------------------------------------------
def trans_block_kernel(xpad_ref, a1_ref, b1_ref, a2_ref, b2_ref,
                       a21_ref, b21_ref, out_ref, x2pad_ref):
    # xpad_ref : (H+2, W*Cin)   bf16  one image, rows lane-flattened as (w, c)
    # a1_ref   : (W*Cin, W*F)   bf16  block-diagonal 1x1-conv weights (BN folded)
    # a2_ref   : (3, W*Cin, W*F) bf16 banded 3x3-conv weights, one slab per ky
    # a21_ref  : (3, W*F, W*F)  bf16  banded 3x3-conv weights for conv2_1
    # b*_ref   : (1, W*F)       f32   per-row-tiled folded biases
    # out_ref  : (H, W*F)       f32   lane-dense output rows
    # x2pad_ref: (H+2, W*F)     f32   scratch: row-padded ReLU(conv2) activations
    Hp = xpad_ref.shape[0]
    H, WF = out_ref.shape
    bf16 = jnp.bfloat16

    def mm(a, b):
        return jnp.dot(a, b, preferred_element_type=jnp.float32)

    # Center rows (original rows 0..H-1): reused by the 1x1 branch and by the
    # ky=1 tap of the first 3x3 conv.
    center = xpad_ref[1:1 + H, :]                               # (H, W*Cin)

    # ---- branch 1: 1x1 conv (BN folded) ------------------------------------
    x1 = mm(center, a1_ref[...]) + b1_ref[...]                  # (H, W*F) f32

    # ---- branch 2: 3x3 conv (BN folded) + ReLU ------------------------------
    # Horizontal taps + horizontal zero-pad are folded into the banded RHS, so
    # the 9-tap conv collapses to 3 lane-dense matmuls.
    acc2 = mm(xpad_ref[0:H, :], a2_ref[0])
    acc2 = acc2 + mm(center, a2_ref[1])
    acc2 = acc2 + mm(xpad_ref[2:2 + H, :], a2_ref[2])
    x2 = jnp.maximum(acc2 + b2_ref[...], 0.0)                   # (H, W*F) f32

    # Stage x2 in a row-padded scratch; zero ONLY the two border rows.
    zrow = jnp.zeros((1, WF), x2pad_ref.dtype)
    x2pad_ref[0:1, :] = zrow
    x2pad_ref[Hp - 1:Hp, :] = zrow
    x2pad_ref[1:1 + H, :] = x2

    # ---- second 3x3 conv (BN folded) ----------------------------------------
    x2_bf = x2.astype(bf16)                                     # center-tap reuse
    acc3 = mm(x2pad_ref[0:H, :].astype(bf16), a21_ref[0])
    acc3 = acc3 + mm(x2_bf, a21_ref[1])
    acc3 = acc3 + mm(x2pad_ref[2:2 + H, :].astype(bf16), a21_ref[2])
    x2_1 = acc3 + b21_ref[...]

    # ---- residual add + ReLU (f32 epilogue, lane-dense store) ---------------
    out_ref[...] = jnp.maximum(x1 + x2_1, 0.0)


# ----------------------------------------------------------------------------
# Wrapper: NCHW <-> lane-dense glue + pallas_call
# ----------------------------------------------------------------------------
def trans_block_forward(x_nchw, eff):
    N, Cin, H, W = x_nchw.shape
    WF = eff["a1"].shape[1]
    F = WF // W
    Hp = H + 2
    WCin = W * Cin

    # NCHW -> (N, H, W*Cin) lane-dense rows; pad one zero row top/bottom only
    # (the horizontal pad is folded into the banded weights); cast to bf16.
    x_rows = jnp.transpose(x_nchw, (0, 2, 3, 1)).reshape(N, H, WCin)
    xpad = jnp.pad(x_rows, ((0, 0), (1, 1), (0, 0))).astype(jnp.bfloat16)

    out_rows = pl.pallas_call(
        trans_block_kernel,
        out_shape=jax.ShapeDtypeStruct((N, H, WF), jnp.float32),
        grid=(N,),
        in_specs=[
            pl.BlockSpec((None, Hp, WCin), lambda n: (n, 0, 0)),   # one image
            pl.BlockSpec((WCin, WF), lambda n: (0, 0)),            # a1
            pl.BlockSpec((1, WF), lambda n: (0, 0)),               # b1
            pl.BlockSpec((3, WCin, WF), lambda n: (0, 0, 0)),      # a2
            pl.BlockSpec((1, WF), lambda n: (0, 0)),               # b2
            pl.BlockSpec((3, WF, WF), lambda n: (0, 0, 0)),        # a21
            pl.BlockSpec((1, WF), lambda n: (0, 0)),               # b21
        ],
        out_specs=pl.BlockSpec((None, H, WF), lambda n: (n, 0, 0)),
        scratch_shapes=[pltpu.VMEM((Hp, WF), jnp.float32)],
        compiler_params=pltpu.CompilerParams(
            dimension_semantics=("parallel",)),
    )(xpad, eff["a1"], eff["b1"], eff["a2"], eff["b2"], eff["a21"], eff["b21"])

    # (N, H, W*F) -> (N, H, W, F) -> NCHW
    return jnp.transpose(out_rows.reshape(N, H, W, F), (0, 3, 1, 2))


# ----------------------------------------------------------------------------
# Deterministic parameter construction (PyTorch-shaped) + BN folding + banding
# ----------------------------------------------------------------------------
def make_params(key, cin, f):
    ks = jax.random.split(key, 16)
    n = lambda k, s, sc=0.1: sc * jax.random.normal(k, s, jnp.float32)
    p = {
        # conv weights in PyTorch layout (Out, In, kH, kW)
        "conv1_w": n(ks[0], (f, cin, 1, 1)), "conv1_b": n(ks[1], (f,)),
        "conv2_w": n(ks[2], (f, cin, 3, 3)), "conv2_b": n(ks[3], (f,)),
        "conv21_w": n(ks[4], (f, f, 3, 3)), "conv21_b": n(ks[5], (f,)),
    }
    for i, name in enumerate(["bn1", "bn2", "bn21"]):
        k0, k1, k2, k3 = jax.random.split(ks[6 + i], 4)
        p[name] = dict(
            gamma=1.0 + 0.1 * jax.random.normal(k0, (f,), jnp.float32),
            beta=0.1 * jax.random.normal(k1, (f,), jnp.float32),
            mean=0.1 * jax.random.normal(k2, (f,), jnp.float32),
            var=0.5 + jnp.abs(jax.random.normal(k3, (f,), jnp.float32)) * 0.5,
        )
    return p


def fold_bn(w_oihw, b, bn, eps=1e-5):
    # eval-mode BN folded into conv: exact algebraic rewrite
    scale = bn["gamma"] / jnp.sqrt(bn["var"] + eps)            # (F,)
    w_eff = w_oihw * scale[:, None, None, None]
    b_eff = (b - bn["mean"]) * scale + bn["beta"]
    return w_eff, b_eff


def band_from_3x3(w_oihw, W):
    # (F, C, 3, 3) -> banded (3, W*C, W*F) with
    #   band[ky, w_in*C + c, w_out*F + f] = w[f, c, ky, w_in - w_out + 1]
    # entries with (w_in - w_out + 1) outside [0, 2] are zero == horizontal pad.
    F, C = w_oihw.shape[0], w_oihw.shape[1]
    w_t = jnp.transpose(w_oihw, (2, 3, 1, 0))                  # (ky, kx, C, F)
    wi = jnp.arange(W)[:, None]
    wo = jnp.arange(W)[None, :]
    kx = wi - wo + 1                                           # (W, W)
    valid = ((kx >= 0) & (kx <= 2)).astype(w_oihw.dtype)
    band = w_t[:, jnp.clip(kx, 0, 2), :, :]                    # (3, W, W, C, F)
    band = band * valid[None, :, :, None, None]
    band = jnp.transpose(band, (0, 1, 3, 2, 4))                # (3, wi, C, wo, F)
    return band.reshape(3, W * C, W * F)


def band_from_1x1(w_oi, W):
    # (F, C) -> block-diagonal (W*C, W*F)
    F, C = w_oi.shape
    eye = jnp.eye(W, dtype=w_oi.dtype)                         # (wi, wo)
    a = eye[:, None, :, None] * jnp.transpose(w_oi)[None, :, None, :]
    return a.reshape(W * C, W * F)


def make_effective(p, W):
    w1, b1 = fold_bn(p["conv1_w"], p["conv1_b"], p["bn1"])
    w2, b2 = fold_bn(p["conv2_w"], p["conv2_b"], p["bn2"])
    w21, b21 = fold_bn(p["conv21_w"], p["conv21_b"], p["bn21"])
    bf = jnp.bfloat16
    F = b1.shape[0]
    return {
        "a1": band_from_1x1(w1[:, :, 0, 0], W).astype(bf),
        "a2": band_from_3x3(w2, W).astype(bf),
        "a21": band_from_3x3(w21, W).astype(bf),
        "b1": jnp.tile(b1, W).reshape(1, W * F).astype(jnp.float32),
        "b2": jnp.tile(b2, W).reshape(1, W * F).astype(jnp.float32),
        "b21": jnp.tile(b21, W).reshape(1, W * F).astype(jnp.float32),
    }


# ----------------------------------------------------------------------------
# Pure-JAX reference (mirrors the PyTorch forward, eval-mode BN, f32)
# ----------------------------------------------------------------------------
def reference_forward(x, p, eps=1e-5):
    dn = ("NCHW", "OIHW", "NCHW")

    def conv(x, w, b, pad):
        y = jax.lax.conv_general_dilated(x, w, (1, 1), pad,
                                         dimension_numbers=dn)
        return y + b[None, :, None, None]

    def bn(x, s):
        c = lambda v: v[None, :, None, None]
        return (x - c(s["mean"])) / jnp.sqrt(c(s["var"]) + eps) * c(s["gamma"]) + c(s["beta"])

    x1 = bn(conv(x, p["conv1_w"], p["conv1_b"], "VALID"), p["bn1"])
    x2 = jax.nn.relu(bn(conv(x, p["conv2_w"], p["conv2_b"], "SAME"), p["bn2"]))
    x2_1 = bn(conv(x2, p["conv21_w"], p["conv21_b"], "SAME"), p["bn21"])
    return jax.nn.relu(x1 + x2_1)


if __name__ == "__main__":
    key = jax.random.PRNGKey(0)
    k_x, k_p = jax.random.split(key)

    N, Cin, H, W, F = 2, 4, 16, 16, 8
    x = jax.random.normal(k_x, (N, Cin, H, W), jnp.float32)

    params = make_params(k_p, Cin, F)
    eff = make_effective(params, W)

    out = jax.block_until_ready(trans_block_forward(x, eff))
    ref = jax.block_until_ready(reference_forward(x, params))

    assert out.shape == (N, F, H, W)
    err = jnp.max(jnp.abs(out - ref))
    # bf16 matmul inputs (f32 accumulation) vs. an all-f32 reference -> loosened tol.
    assert jnp.allclose(out, ref, rtol=3e-2, atol=3e-2), f"max abs err = {err}"

    print("KERNEL_OK")
</pallas_src>

<mosaic_0001>
module attributes {stable_mosaic.version = 11 : i64} {
  func.func @trans_block_kernel(%arg0: i32, %arg1: memref<1x18x64xbf16, #tpu.memory_space<vmem>>, %arg2: memref<64x128xbf16, #tpu.memory_space<vmem>>, %arg3: memref<1x128xf32, #tpu.memory_space<vmem>>, %arg4: memref<3x64x128xbf16, #tpu.memory_space<vmem>>, %arg5: memref<1x128xf32, #tpu.memory_space<vmem>>, %arg6: memref<3x128x128xbf16, #tpu.memory_space<vmem>>, %arg7: memref<1x128xf32, #tpu.memory_space<vmem>>, %arg8: memref<1x16x128xf32, #tpu.memory_space<vmem>>, %arg9: memref<18x128xf32, #tpu.memory_space<vmem>>) attributes {dimension_semantics = [#tpu.dimension_semantics<parallel>], iteration_bounds = array<i64: 2>, scalar_prefetch = 0 : i64, scratch_operands = 1 : i64, tpu.core_type = #tpu.core_type<tc>, window_params = [{transform_indices = @transform_0, window_bounds = array<i64: 1, 18, 64>}, {pipeline_mode = #tpu.pipeline_mode<synchronous>, transform_indices = @transform_1, window_bounds = array<i64: 64, 128>}, {pipeline_mode = #tpu.pipeline_mode<synchronous>, transform_indices = @transform_2, window_bounds = array<i64: 1, 128>}, {pipeline_mode = #tpu.pipeline_mode<synchronous>, transform_indices = @transform_3, window_bounds = array<i64: 3, 64, 128>}, {pipeline_mode = #tpu.pipeline_mode<synchronous>, transform_indices = @transform_4, window_bounds = array<i64: 1, 128>}, {pipeline_mode = #tpu.pipeline_mode<synchronous>, transform_indices = @transform_5, window_bounds = array<i64: 3, 128, 128>}, {pipeline_mode = #tpu.pipeline_mode<synchronous>, transform_indices = @transform_6, window_bounds = array<i64: 1, 128>}, {transform_indices = @transform_7, window_bounds = array<i64: 1, 16, 128>}]} {
    %c0 = arith.constant 0 : index
    %c1 = arith.constant 1 : index
    %c0_0 = arith.constant 0 : index
    %0 = vector.load %arg1[%c0, %c1, %c0_0] : memref<1x18x64xbf16, #tpu.memory_space<vmem>>, vector<1x16x64xbf16>
    %1 = vector.shape_cast %0 : vector<1x16x64xbf16> to vector<16x64xbf16>
    %c0_1 = arith.constant 0 : index
    %c0_2 = arith.constant 0 : index
    %2 = vector.load %arg2[%c0_1, %c0_2] : memref<64x128xbf16, #tpu.memory_space<vmem>>, vector<64x128xbf16>
    %cst = arith.constant dense<0.000000e+00> : vector<16x128xf32>
    %3 = tpu.matmul %1, %2, %cst {dimension_numbers = #tpu.dot_dimension_numbers<[1], [0], [0], [1], [0, 0, 1, 1], [], []>} : vector<16x64xbf16>, vector<64x128xbf16>, vector<16x128xf32> -> vector<16x128xf32>
    %c0_3 = arith.constant 0 : index
    %c0_4 = arith.constant 0 : index
    %4 = vector.load %arg3[%c0_3, %c0_4] : memref<1x128xf32, #tpu.memory_space<vmem>>, vector<1x128xf32>
    %5 = vector.broadcast %4 : vector<1x128xf32> to vector<16x128xf32>
    %6 = arith.addf %3, %5 : vector<16x128xf32>
    %c0_5 = arith.constant 0 : index
    %c0_6 = arith.constant 0 : index
    %c0_7 = arith.constant 0 : index
    %7 = vector.load %arg1[%c0_5, %c0_6, %c0_7] : memref<1x18x64xbf16, #tpu.memory_space<vmem>>, vector<1x16x64xbf16>
    %8 = vector.shape_cast %7 : vector<1x16x64xbf16> to vector<16x64xbf16>
    %c0_8 = arith.constant 0 : index
    %c0_9 = arith.constant 0 : index
    %c0_10 = arith.constant 0 : index
    %9 = vector.load %arg4[%c0_8, %c0_9, %c0_10] : memref<3x64x128xbf16, #tpu.memory_space<vmem>>, vector<1x64x128xbf16>
    %10 = vector.shape_cast %9 : vector<1x64x128xbf16> to vector<64x128xbf16>
    %cst_11 = arith.constant dense<0.000000e+00> : vector<16x128xf32>
    %11 = tpu.matmul %8, %10, %cst_11 {dimension_numbers = #tpu.dot_dimension_numbers<[1], [0], [0], [1], [0, 0, 1, 1], [], []>} : vector<16x64xbf16>, vector<64x128xbf16>, vector<16x128xf32> -> vector<16x128xf32>
    %c1_12 = arith.constant 1 : index
    %c0_13 = arith.constant 0 : index
    %c0_14 = arith.constant 0 : index
    %12 = vector.load %arg4[%c1_12, %c0_13, %c0_14] : memref<3x64x128xbf16, #tpu.memory_space<vmem>>, vector<1x64x128xbf16>
    %13 = vector.shape_cast %12 : vector<1x64x128xbf16> to vector<64x128xbf16>
    %cst_15 = arith.constant dense<0.000000e+00> : vector<16x128xf32>
    %14 = tpu.matmul %1, %13, %cst_15 {dimension_numbers = #tpu.dot_dimension_numbers<[1], [0], [0], [1], [0, 0, 1, 1], [], []>} : vector<16x64xbf16>, vector<64x128xbf16>, vector<16x128xf32> -> vector<16x128xf32>
    %15 = arith.addf %11, %14 : vector<16x128xf32>
    %c0_16 = arith.constant 0 : index
    %c2 = arith.constant 2 : index
    %c0_17 = arith.constant 0 : index
    %16 = vector.load %arg1[%c0_16, %c2, %c0_17] : memref<1x18x64xbf16, #tpu.memory_space<vmem>>, vector<1x16x64xbf16>
    %17 = vector.shape_cast %16 : vector<1x16x64xbf16> to vector<16x64xbf16>
    %c2_18 = arith.constant 2 : index
    %c0_19 = arith.constant 0 : index
    %c0_20 = arith.constant 0 : index
    %18 = vector.load %arg4[%c2_18, %c0_19, %c0_20] : memref<3x64x128xbf16, #tpu.memory_space<vmem>>, vector<1x64x128xbf16>
    %19 = vector.shape_cast %18 : vector<1x64x128xbf16> to vector<64x128xbf16>
    %cst_21 = arith.constant dense<0.000000e+00> : vector<16x128xf32>
    %20 = tpu.matmul %17, %19, %cst_21 {dimension_numbers = #tpu.dot_dimension_numbers<[1], [0], [0], [1], [0, 0, 1, 1], [], []>} : vector<16x64xbf16>, vector<64x128xbf16>, vector<16x128xf32> -> vector<16x128xf32>
    %21 = arith.addf %15, %20 : vector<16x128xf32>
    %c0_22 = arith.constant 0 : index
    %c0_23 = arith.constant 0 : index
    %22 = vector.load %arg5[%c0_22, %c0_23] : memref<1x128xf32, #tpu.memory_space<vmem>>, vector<1x128xf32>
    %23 = vector.broadcast %22 : vector<1x128xf32> to vector<16x128xf32>
    %24 = arith.addf %21, %23 : vector<16x128xf32>
    %cst_24 = arith.constant 0.000000e+00 : f32
    %25 = vector.broadcast %cst_24 : f32 to vector<16x128xf32>
    %26 = arith.maximumf %24, %25 : vector<16x128xf32>
    %cst_25 = arith.constant 0.000000e+00 : f32
    %27 = vector.broadcast %cst_25 : f32 to vector<1x128xf32>
    %c0_26 = arith.constant 0 : index
    %c0_27 = arith.constant 0 : index
    %28 = vector.load %arg9[%c0_26, %c0_27] : memref<18x128xf32, #tpu.memory_space<vmem>>, vector<1x128xf32>
    tpu.vector_store %arg9[%c0_26, %c0_27], %27 {strides = array<i32>} : memref<18x128xf32, #tpu.memory_space<vmem>>, vector<1x128xf32>,
    %c17 = arith.constant 17 : index
    %c0_28 = arith.constant 0 : index
    %29 = vector.load %arg9[%c17, %c0_28] : memref<18x128xf32, #tpu.memory_space<vmem>>, vector<1x128xf32>
    tpu.vector_store %arg9[%c17, %c0_28], %27 {strides = array<i32>} : memref<18x128xf32, #tpu.memory_space<vmem>>, vector<1x128xf32>,
    %c1_29 = arith.constant 1 : index
    %c0_30 = arith.constant 0 : index
    %30 = vector.load %arg9[%c1_29, %c0_30] : memref<18x128xf32, #tpu.memory_space<vmem>>, vector<16x128xf32>
    tpu.vector_store %arg9[%c1_29, %c0_30], %26 {strides = array<i32>} : memref<18x128xf32, #tpu.memory_space<vmem>>, vector<16x128xf32>,
    %31 = arith.truncf %26 : vector<16x128xf32> to vector<16x128xbf16>
    %c0_31 = arith.constant 0 : index
    %c0_32 = arith.constant 0 : index
    %32 = vector.load %arg9[%c0_31, %c0_32] : memref<18x128xf32, #tpu.memory_space<vmem>>, vector<16x128xf32>
    %33 = arith.truncf %32 : vector<16x128xf32> to vector<16x128xbf16>
    %c0_33 = arith.constant 0 : index
    %c0_34 = arith.constant 0 : index
    %c0_35 = arith.constant 0 : index
    %34 = vector.load %arg6[%c0_33, %c0_34, %c0_35] : memref<3x128x128xbf16, #tpu.memory_space<vmem>>, vector<1x128x128xbf16>
    %35 = vector.shape_cast %34 : vector<1x128x128xbf16> to vector<128x128xbf16>
    %cst_36 = arith.constant dense<0.000000e+00> : vector<16x128xf32>
    %36 = tpu.matmul %33, %35, %cst_36 {dimension_numbers = #tpu.dot_dimension_numbers<[1], [0], [0], [1], [0, 0, 1, 1], [], []>} : vector<16x128xbf16>, vector<128x128xbf16>, vector<16x128xf32> -> vector<16x128xf32>
    %c1_37 = arith.constant 1 : index
    %c0_38 = arith.constant 0 : index
    %c0_39 = arith.constant 0 : index
    %37 = vector.load %arg6[%c1_37, %c0_38, %c0_39] : memref<3x128x128xbf16, #tpu.memory_space<vmem>>, vector<1x128x128xbf16>
    %38 = vector.shape_cast %37 : vector<1x128x128xbf16> to vector<128x128xbf16>
    %cst_40 = arith.constant dense<0.000000e+00> : vector<16x128xf32>
    %39 = tpu.matmul %31, %38, %cst_40 {dimension_numbers = #tpu.dot_dimension_numbers<[1], [0], [0], [1], [0, 0, 1, 1], [], []>} : vector<16x128xbf16>, vector<128x128xbf16>, vector<16x128xf32> -> vector<16x128xf32>
    %40 = arith.addf %36, %39 : vector<16x128xf32>
    %c2_41 = arith.constant 2 : index
    %c0_42 = arith.constant 0 : index
    %41 = vector.load %arg9[%c2_41, %c0_42] : memref<18x128xf32, #tpu.memory_space<vmem>>, vector<16x128xf32>
    %42 = arith.truncf %41 : vector<16x128xf32> to vector<16x128xbf16>
    %c2_43 = arith.constant 2 : index
    %c0_44 = arith.constant 0 : index
    %c0_45 = arith.constant 0 : index
    %43 = vector.load %arg6[%c2_43, %c0_44, %c0_45] : memref<3x128x128xbf16, #tpu.memory_space<vmem>>, vector<1x128x128xbf16>
    %44 = vector.shape_cast %43 : vector<1x128x128xbf16> to vector<128x128xbf16>
    %cst_46 = arith.constant dense<0.000000e+00> : vector<16x128xf32>
    %45 = tpu.matmul %42, %44, %cst_46 {dimension_numbers = #tpu.dot_dimension_numbers<[1], [0], [0], [1], [0, 0, 1, 1], [], []>} : vector<16x128xbf16>, vector<128x128xbf16>, vector<16x128xf32> -> vector<16x128xf32>
    %46 = arith.addf %40, %45 : vector<16x128xf32>
    %c0_47 = arith.constant 0 : index
    %c0_48 = arith.constant 0 : index
    %47 = vector.load %arg7[%c0_47, %c0_48] : memref<1x128xf32, #tpu.memory_space<vmem>>, vector<1x128xf32>
    %48 = vector.broadcast %47 : vector<1x128xf32> to vector<16x128xf32>
    %49 = arith.addf %46, %48 : vector<16x128xf32>
    %50 = arith.addf %6, %49 : vector<16x128xf32>
    %cst_49 = arith.constant 0.000000e+00 : f32
    %51 = vector.broadcast %cst_49 : f32 to vector<16x128xf32>
    %52 = arith.maximumf %50, %51 : vector<16x128xf32>
    %c0_50 = arith.constant 0 : index
    %c0_51 = arith.constant 0 : index
    %c0_52 = arith.constant 0 : index
    %53 = vector.load %arg8[%c0_50, %c0_51, %c0_52] : memref<1x16x128xf32, #tpu.memory_space<vmem>>, vector<1x16x128xf32>
    %54 = vector.shape_cast %53 : vector<1x16x128xf32> to vector<16x128xf32>
    %55 = vector.shape_cast %52 : vector<16x128xf32> to vector<1x16x128xf32>
    tpu.vector_store %arg8[%c0_50, %c0_51, %c0_52], %55 {strides = array<i32>} : memref<1x16x128xf32, #tpu.memory_space<vmem>>, vector<1x16x128xf32>,
    return
  }
  func.func @transform_0(%arg0: i32) -> (i32, i32, i32) {
    %c0_i32 = arith.constant 0 : i32
    %c0_i32_0 = arith.constant 0 : i32
    %c0_i32_1 = arith.constant 0 : i32
    return %arg0, %c0_i32, %c0_i32_0 : i32, i32, i32
  }
  func.func @transform_1(%arg0: i32) -> (i32, i32) {
    %c0_i32 = arith.constant 0 : i32
    %c0_i32_0 = arith.constant 0 : i32
    %c0_i32_1 = arith.constant 0 : i32
    return %c0_i32, %c0_i32_0 : i32, i32
  }
  func.func @transform_2(%arg0: i32) -> (i32, i32) {
    %c0_i32 = arith.constant 0 : i32
    %c0_i32_0 = arith.constant 0 : i32
    %c0_i32_1 = arith.constant 0 : i32
    return %c0_i32, %c0_i32_0 : i32, i32
  }
  func.func @transform_3(%arg0: i32) -> (i32, i32, i32) {
    %c0_i32 = arith.constant 0 : i32
    %c0_i32_0 = arith.constant 0 : i32
    %c0_i32_1 = arith.constant 0 : i32
    %c0_i32_2 = arith.constant 0 : i32
    return %c0_i32, %c0_i32_0, %c0_i32_1 : i32, i32, i32
  }
  func.func @transform_4(%arg0: i32) -> (i32, i32) {
    %c0_i32 = arith.constant 0 : i32
    %c0_i32_0 = arith.constant 0 : i32
    %c0_i32_1 = arith.constant 0 : i32
    return %c0_i32, %c0_i32_0 : i32, i32
  }
  func.func @transform_5(%arg0: i32) -> (i32, i32, i32) {
    %c0_i32 = arith.constant 0 : i32
    %c0_i32_0 = arith.constant 0 : i32
    %c0_i32_1 = arith.constant 0 : i32
    %c0_i32_2 = arith.constant 0 : i32
    return %c0_i32, %c0_i32_0, %c0_i32_1 : i32, i32, i32
  }
  func.func @transform_6(%arg0: i32) -> (i32, i32) {
    %c0_i32 = arith.constant 0 : i32
    %c0_i32_0 = arith.constant 0 : i32
    %c0_i32_1 = arith.constant 0 : i32
    return %c0_i32, %c0_i32_0 : i32, i32
  }
  func.func @transform_7(%arg0: i32) -> (i32, i32, i32) {
    %c0_i32 = arith.constant 0 : i32
    %c0_i32_0 = arith.constant 0 : i32
    %c0_i32_1 = arith.constant 0 : i32
    return %arg0, %c0_i32, %c0_i32_0 : i32, i32, i32
  }
}

</mosaic_0001>

<bundles_post_ra>
// kernel: tpu_custom_call.1
= control target key start
LH: loop header
LB: loop body
LE: loop exit
PB: predicated region body
PF: predicated region fallthrough
CT: control target
= control target key end

     0   :  { %12 = vsyncpa [#allocation4], 0  ;;  %s1859_s0 = inlined_call_operand.vmem [shape: bf16[2,18,64], index: 0, kind: input, shape index: {}]   ;;  %s1860_s1 = inlined_call_operand.vmem [shape: bf16[64,128], index: 1, kind: input, shape index: {}]   ;;  %s1861_s2 = inlined_call_operand.vmem [shape: f32[1,128], index: 2, kind: input, shape index: {}]   ;;  %s1862_s3 = inlined_call_operand.hbm [shape: bf16[3,64,128], index: 3, kind: input, shape index: {}]   ;;  %s1863_s4 = inlined_call_operand.vmem [shape: f32[1,128], index: 4, kind: input, shape index: {}]   ;;  %s1864_s5 = inlined_call_operand.hbm [shape: bf16[3,128,128], index: 5, kind: input, shape index: {}]   ;;  %s1865_s6 = inlined_call_operand.vmem [shape: f32[1,128], index: 6, kind: input, shape index: {}]   ;;  %s1866_s7 = inlined_call_operand.hbm [shape: f32[2,16,128], index: 7, kind: output, shape index: {}]  }
   0x1   :  { %13 = vsyncpa [#allocation7], 0 }
   0x2   :  { %14 = vsyncpa [#allocation5], 0 }
   0x3   :  { %16 = vsyncpa [#allocation5 + $0x1], 0  ;;  %s1618_s24 = smov 0   ;;  %s1620_s25 = smov 0  }
   0x4   :  { %s1622_s26 = smov 0   ;;  %s1624_s27 = smov 0  }
   0x5 LB: > { %s1639_s28 = sadd.s32 4294967295, %s1567_s27   ;;  %s1114_s29 = sadd.s32 4294967294, %s1567_s27   ;;  %s1567_s27 = sphi %s1624_s27, %s1880_s27   ;;  %s1563_s26 = sphi %s1622_s26, %s1879_s26   ;;  %s1559_s25 = sphi %s1620_s25, %s1878_s25   ;;  %s1555_s24 = sphi %s1618_s24, %s1877_s24  }
   0x6   : > { %s1643_s30 = sadd.s32 1, %s1567_s27   ;;  %s181_s8 = sadd.s32 1, %s1563_s26 }
   0x7   : > { %s178_s9 = ssub.s32 %s1567_s27, %s1643_s30  ;;  %p191_p0 = scmp.ne.s32.totalorder %s1563_s26, %s1559_s25 }
   0x8   : > { %p179_p1 = scmp.eq.s32.totalorder %s178_s9, 0  ;;  %p192_p2 = scmp.eq.s32.totalorder %s1639_s28, 1 }
   0x9   : > { %p197_p3 = scmp.ne.s32.totalorder %s1559_s25, %s1555_s24  ;;  %p198_p4 = scmp.eq.s32.totalorder %s1114_s29, 1 }
   0xa   : > { %s1654_s10 = scalar_select %p179_p1, %s1563_s26, %s181_s8  }
   0xb   : > { %p1656_p5 = por %p192_p2, %p191_p0  ;;  %p1660_p6 = por %p198_p4, %p197_p3 }
   0xc   : > { %p1115_p7 = scmp.ge.s32.totalorder %s1567_s27, 1  ;;  %p205_p8 = scmp.lt.s32.totalorder %s1567_s27, 3 }
   0xd   : > { %s1869_s12 = scalar_select %p1660_p6, 1, 0 }
   0xe   : > { %p1867_p9 = scmp.eq.s32.totalorder %s1639_s28, 0  ;;  %p1667_p10 = pnand %p1115_p7, %p205_p8 }
   0xf   : > { %s1569_s14 = smov [#allocation3]   ;;  %s1570_s17 = smov [#allocation6]  }
  0x10   : > { %s223_s15 = sshll.u32 %s1569_s14, 4  ;;  %p1347_p11 = pneg %p1667_p10  ;;  %s224_s15 = int_to_ptr.vmem [resolvable:$true] %s223_s15 }
  0x11   : > { %s239_s18 = sshll.u32 %s1570_s17, 4  ;;  %s1458_s19 = scalar_lea.vmem %s224_s15, 1536  ;;  %s240_s18 = int_to_ptr.vmem [resolvable:$true] %s239_s18 }
  0x12   : > { %p1675_p12 = pnand %p1867_p9, %p1347_p11  ;;  %p1459_p0 = scmp.ne.s32.totalorder %s224_s15, %s1458_s19 }
  0x13   : > { %p1466_p3 = scmp.lt.s32.totalorder %s224_s15, %s224_s15  ;;  %p1467_p4 = scmp.lt.s32.totalorder %s1458_s19, %s1458_s19 }
  0x14   : > { %p1449_p13 = pneg %p1675_p12 }
  0x15   : > { %p1468_p7 = por %p1467_p4, %p1466_p3 }
  0x16   : > { %p1461_p1 = pnand %p1459_p0, %p1449_p13 }
  0x18   : > { %p1462_p2 = pneg %p1461_p1 }
  0x1a   : > { %p1469_p8 = pnand %p1468_p7, %p1462_p2 }
  0x1c   : > { %1472 = shalt.err (!%p1469_p8)
}
  0x1d   : > { %s1571_s20 = smov 64   ;;  %s1572_s21 = smov 4  }
  0x1e   : > { %1350 = dma.hbm_to_vmem [thread:$0]  (!%p1675_p12), %s1862_s3, 1536, %s224_s15, [#allocation4], %s1571_s20, %s1571_s20, %s1572_s21  }
  0x1f   : > { %s1484_s29 = scalar_lea.vmem %s240_s18, 3072  ;;  %p1492_p9 = scmp.lt.s32.totalorder %s240_s18, %s240_s18 }
  0x20   : > { %p1485_p11 = scmp.ne.s32.totalorder %s240_s18, %s1484_s29  ;;  %p1493_p6 = scmp.lt.s32.totalorder %s1484_s29, %s1484_s29 }
  0x22   : > { %p1487_p0 = pnand %p1485_p11, %p1449_p13  ;;  %p1494_p3 = por %p1493_p6, %p1492_p9 }
  0x24   : > { %p1488_p1 = pneg %p1487_p0 }
  0x26   : > { %p1495_p2 = pnand %p1494_p3, %p1488_p1 }
  0x28   : > { %1498 = shalt.err (!%p1495_p2)
}
  0x29   : > { %1353 = dma.hbm_to_vmem [thread:$0]  (!%p1675_p12), %s1864_s5, 3072, %s240_s18, [#allocation7], %s1571_s20, %s1571_s20, %s1572_s21  }
  0x2a   : > { %266 = sbr.rel (%p1667_p10) target bundleno = 557 (0x22d), region = 48  ;;  %p1872_p4 = scmp.eq.s32.totalorder (!%p1667_p10), %s1639_s28, 0 }
  0x2f   : > { %1542 = dma.done.wait (%p1872_p4), [#allocation4], 1536   ;;  %p1873_p13 = pmov %p1872_p4 }
  0x30   : > { %p1874_p7 = pmov %p1872_p4 }
  0x31   : > { %1544 = vsyncadd (%p1873_p13), [#allocation4], 4294965760 }
  0x32   : > { %1546 = dma.done.wait (%p1874_p7), [#allocation7], 3072   ;;  %p1875_p6 = pmov %p1872_p4 }
  0x33   : > { %p302_p9 = scmp.lt.s32.totalorder %s1639_s28, 1  ;;  %v1573_v0 = vmov 0.0   ;;  %vm1574_vm0 = vmmov 0   ;;  %v1403_v1 = vld [vmem:[%s1860_s1 + $0x18] sm:$0xff]   ;;  %v1404_v2 = vld [vmem:[%s1860_s1 + $0x10] sm:$0xff]   ;;  %v1405_v5 = vld [vmem:[%s1860_s1 + $0x8] sm:$0xff]  }
  0x34   : > { %1548 = vsyncadd (%p1875_p6), [#allocation7], 4294964224  ;;  %1228 = vmatprep.subr.bf16.mxu1 %v1573_v0  ;;  %671 = vst [vmem:[#allocation2] sm:$0x1] %v1573_v0  ;;  %1236 = vmatprep.mubr.msk.bf16.mxu1 %vm1574_vm0, %v1573_v0  ;;  %v1410_v11 = vld [vmem:[#allocation3 + $0x18] sm:$0xff]   ;;  %v1406_v12 = vld [vmem:[%s1860_s1] sm:$0xff]  }
  0x35   : > { %672 = vst [vmem:[#allocation2 + $0x11] sm:$0x1] %v1573_v0  ;;  %s303_s13 = scalar_select %p302_p9, %s1639_s28, 1  ;;  %1252 = vmatprep.subr.bf16.mxu0 %v1573_v0  ;;  %1260 = vmatprep.mubr.msk.bf16.mxu0 %vm1574_vm0, %v1573_v0  ;;  %v1412_v15 = vld [vmem:[#allocation3 + $0x10] sm:$0xff]   ;;  %vm334_vm1 = vsmask.f32 7424 }
  0x36   : > { %1229 = vmatpush3.bf16.msra.mxu1 %v1403_v1  ;;  %1253 = vmatpush3.bf16.msra.mxu0 %v1410_v11  ;;  %v1414_v17 = vld [vmem:[#allocation3 + $0x8] sm:$0xff]   ;;  %vm371_vm2 = vcmask 523264   ;;  %v1409_v19 = vld [vmem:[#allocation3 + $0x38] sm:$0xff]   ;;  %v1416_v20 = vld [vmem:[#allocation3] sm:$0xff]   ;;  %vm586_vm3 = vcmask 1046528   ;;  %s299_s16 = sand.u32 1, %s1559_s25  }
  0x37   : > { %s1336_s14 = smul.u32 12, %s303_s13  ;;  %1230 = vmatprep.subr.bf16.mxu1 %v1573_v0  ;;  %1254 = vmatprep.subr.bf16.mxu0 %v1573_v0  ;;  %v1411_v21 = vld [vmem:[#allocation3 + $0x30] sm:$0xff]   ;;  %v1413_v23 = vld [vmem:[#allocation3 + $0x28] sm:$0xff]   ;;  %v1415_v24 = vld [vmem:[#allocation3 + $0x20] sm:$0xff]   ;;  %s1180_s22 = sshll.u32 %s1639_s28, 8 }
  0x38   : > { %v1418_v25 = vld [vmem:[#allocation3 + $0x58] sm:$0xff]   ;;  %v1419_v26 = vld [vmem:[#allocation3 + $0x50] sm:$0xff]   ;;  %v1420_v28 = vld [vmem:[#allocation3 + $0x48] sm:$0xff]   ;;  %s1817_s8 = scalar_lea.hbm %s1866_s7, %s1180_s22  ;;  %s1819_s9 = scalar_lea.sflag [#allocation5], %s299_s16 }
  0x39   : > { %s1723_s19 = scalar_lea.vmem %s1859_s0, %s1336_s14  ;;  %v1421_v30 = vld [vmem:[#allocation3 + $0x40] sm:$0xff]   ;;  %v1423_v34 = vld [vmem:[#allocation6 + $0x78] sm:$0xff]   ;;  %v1424_v35 = vld [vmem:[#allocation6 + $0x70] sm:$0xff]   ;;  %s1575_s28 = smov [#allocation8]  }
  0x3a   : > { %v308_v3 = vld [vmem:[%s1723_s19] sm:$0xf]  ;;  %v309_v4 = vld [vmem:[%s1723_s19 + $0x4] sm:$0xf]  ;;  %1231 = vmatpush3.bf16.msra.mxu1 %v1404_v2  ;;  %1255 = vmatpush3.bf16.msra.mxu0 %v1412_v15  ;;  %v1426_v37 = vld [vmem:[#allocation6 + $0x38] sm:$0xff]   ;;  %s1503_s14 = sshll.u32 %s1575_s28, 4  ;;  %s1504_s14 = int_to_ptr.vmem [resolvable:$false] %s1503_s14 }
  0x3b   : > { %v1125_v6 = vcombine.low %v308_v3, %v309_v4  ;;  %v1735_v7 = vld [vmem:[%s1723_s19 + $0x8] ss:$0 sps:$4 sm:$0x11]   ;;  %1232 = vmatprep.subr.bf16.mxu1 %v1573_v0  ;;  %1256 = vmatprep.subr.bf16.mxu0 %v1573_v0  ;;  %v1417_v22 = vld [vmem:[%s1723_s19] sm:$0xff]   ;;  %v1427_v38 = vld [vmem:[#allocation6 + $0x60] sm:$0xff]   ;;  %s1505_s15 = scalar_lea.vmem %s1504_s14, 512 }
  0x3c   : > { %v343_v10 = vshll.u32 %v1735_v7, 16  ;;  %v573_v27 = vld [vmem:[%s1723_s19] sm:$0xe]  ;;  %v588_v32 = vrot.slane %v1735_v7, 1  ;;  %v1428_v39 = vld [vmem:[#allocation6 + $0x30] sm:$0xff]   ;;  %v1429_v40 = vld [vmem:[#allocation6 + $0x58] sm:$0xff]  }
  0x3d   : > { %v336_v8 = vshrl.u32 %v1125_v6, 16  ;;  %v338_v9 = vshll.u32 %v1125_v6, 16  ;;  %v1143_v29 = vcombine.low %v573_v27, %v309_v4  ;;  %v1425_v36 = vld [vmem:[#allocation6 + $0x68] sm:$0xff]   ;;  %v1431_v42 = vld [vmem:[#allocation6 + $0x50] sm:$0xff]   ;;  %v1432_v43 = vld [vmem:[#allocation6 + $0x20] sm:$0xff]   ;;  %s1122_s19 = sshll.u32 %s299_s16, 4 }
  0x3e   : > { %v345_v14 = vrot.slane %v343_v10, 1  ;;  %1233 = vmatpush3.bf16.msra.mxu1 %v1405_v5  ;;  %1257 = vmatpush3.bf16.msra.mxu0 %v1414_v17  ;;  %v1430_v41 = vld [vmem:[#allocation6 + $0x28] sm:$0xff]   ;;  %v1434_v45 = vld [vmem:[#allocation6 + $0x18] sm:$0xff]   ;;  %v1435_v46 = vld [vmem:[#allocation6 + $0x40] sm:$0xff]   ;;  %s301_s20 = scalar_lea.vmem [#allocation8], %s1122_s19 }
  0x3f   : > { %v340_v13 = vrot.slane %v338_v9, 1  ;;  %1234 = vmatprep.subr.bf16.mxu1 %v1573_v0  ;;  %1258 = vmatprep.subr.bf16.mxu0 %v1573_v0  ;;  %v587_v31 = vrot.slane %v1143_v29, 1  ;;  %v1433_v44 = vld [vmem:[#allocation6 + $0x48] sm:$0xff]   ;;  %v1436_v47 = vld [vmem:[#allocation6 + $0x10] sm:$0xff]   ;;  %v1440_v49 = vld [vmem:[#allocation6] sm:$0xff]   ;;  %s1030_s21 = sshll.u32 %s301_s20, 4  ;;  %s1812_s21 = int_to_ptr.vmem [resolvable:$true] %s1030_s21 }
  0x40   : > { %v1438_v48 = vld [vmem:[#allocation6 + $0x8] sm:$0xff]   ;;  %s1499_s13 = scalar_lea.vmem %s1812_s21, 256  ;;  %p1506_p11 = scmp.lt.s32.totalorder %s1812_s21, %s1504_s14 }
  0x41   : > { %v341_v16 = vor.u32 %v340_v13, %v336_v8  ;;  %v589_v33 = vsel %vm586_vm3, %v587_v31, %v588_v32  ;;  %v1149_v1 = vld [vmem:[%s1863_s4] ss:$0 sm:$0xff]  ;;  %p1500_p10 = scmp.ne.s32.totalorder %s1812_s21, %s1499_s13  ;;  %p1507_p0 = scmp.lt.s32.totalorder %s1505_s15, %s1499_s13 }
  0x42   : > { %1235 = vmatpush3.bf16.msra.mxu1 %v1406_v12  ;;  %1259 = vmatpush3.bf16.msra.mxu0 %v1416_v20  ;;  %v1437_v12 = vld [vmem:[#allocation6 + $0xb8] sm:$0xff]   ;;  %v1441_v17 = vld [vmem:[#allocation6 + $0xa8] sm:$0xff]  }
  0x43   : > { %v346_v18 = vsel %vm334_vm1, %v341_v16, %v345_v14  ;;  %1240 = vmatprep.subr.bf16.mxu1 %v1573_v0  ;;  %1276 = vmatprep.subr.bf16.mxu0 %v1573_v0  ;;  %v1439_v14 = vld [vmem:[#allocation6 + $0xb0] sm:$0xff]   ;;  %v1443_v20 = vld [vmem:[#allocation6 + $0x98] sm:$0xff]   ;;  %p1501_p12 = pnand %p1500_p10, %p1656_p5  ;;  %p1508_p1 = por %p1507_p0, %p1506_p11 }
  0x45   : > { %1237 = vmatmul.mubr.msk.bf16.vlgmr.msra.gmra.mxu1 %vm371_vm2, %v346_v18  ;;  %1261 = vmatmul.mubr.msk.bf16.vlgmr.msra.gmra.mxu0 %vm371_vm2, %v1417_v22  ;;  %v1445_v22 = vld [vmem:[#allocation6 + $0x88] sm:$0xff]   ;;  %p1502_p8 = pneg %p1501_p12 }
  0x46   : > { %1241 = vmatpush3.bf16.msra.mxu1 %v1409_v19  ;;  %1248 = vmatprep.mubr.msk.bf16.mxu1 %vm1574_vm0, %v1573_v0  ;;  %v1442_v19 = vld [vmem:[#allocation6 + $0xa0] sm:$0xff]  }
  0x47   : > { %1242 = vmatprep.subr.bf16.mxu1 %v1573_v0  ;;  %1292 = vmatprep.mubr.msk.bf16.mxu0 %vm1574_vm0, %v1573_v0  ;;  %p1509_p3 = pnand %p1508_p1, %p1502_p8 }
  0x48   : > { %1277 = vmatpush3.bf16.msra.mxu0 %v1423_v34 }
  0x49   : > { %1278 = vmatprep.subr.bf16.mxu0 %v1573_v0 }
  0x4a   : > { %1243 = vmatpush3.bf16.msra.mxu1 %v1411_v21  ;;  %v1444_v21 = vld [vmem:[#allocation6 + $0x90] sm:$0xff]  }
  0x4b   : > { %1244 = vmatprep.subr.bf16.mxu1 %v1573_v0 }
  0x4c   : > { %1279 = vmatpush3.bf16.msra.mxu0 %v1424_v35 }
  0x4d   : > { %1280 = vmatprep.subr.bf16.mxu0 %v1573_v0 }
  0x4e   : > { %1245 = vmatpush3.bf16.msra.mxu1 %v1413_v23  ;;  %v1446_v23 = vld [vmem:[#allocation6 + $0x80] sm:$0xff]  }
  0x4f   : > { %1246 = vmatprep.subr.bf16.mxu1 %v1573_v0 }
  0x50   : > { %1281 = vmatpush3.bf16.msra.mxu0 %v1425_v36  ;;  %v1124_v36 = vld [vmem:[%s1861_s2] ss:$0 sm:$0xff] }
  0x51   : > { %1282 = vmatprep.subr.bf16.mxu0 %v1573_v0 }
  0x52   : > { %1247 = vmatpush3.bf16.msra.mxu1 %v1415_v24 }
  0x53   : > { %1264 = vmatprep.subr.bf16.mxu1 %v1573_v0 }
  0x54   : > { %1283 = vmatpush3.bf16.msra.mxu0 %v1427_v38 }
  0x55   : > { %1249 = vmatmul.mubr.msk.bf16.vlgmr.msra.gmra.mxu1 %vm371_vm2, %v346_v18  ;;  %1284 = vmatprep.subr.bf16.mxu0 %v1573_v0 }
  0x56   : > { %1265 = vmatpush3.bf16.msra.mxu1 %v1418_v25  ;;  %1272 = vmatprep.mubr.msk.bf16.mxu1 %vm1574_vm0, %v1573_v0 }
  0x57   : > { %1266 = vmatprep.subr.bf16.mxu1 %v1573_v0 }
  0x58   : > { %1285 = vmatpush3.bf16.msra.mxu0 %v1429_v40 }
  0x59   : > { %1286 = vmatprep.subr.bf16.mxu0 %v1573_v0 }
  0x5a   : > { %1267 = vmatpush3.bf16.msra.mxu1 %v1419_v26 }
  0x5b   : > { %1268 = vmatprep.subr.bf16.mxu1 %v1573_v0 }
  0x5c   : > { %1287 = vmatpush3.bf16.msra.mxu0 %v1431_v42 }
  0x5d   : > { %1288 = vmatprep.subr.bf16.mxu0 %v1573_v0 }
  0x5e   : > { %1269 = vmatpush3.bf16.msra.mxu1 %v1420_v28 }
  0x5f   : > { %1270 = vmatprep.subr.bf16.mxu1 %v1573_v0 }
  0x60   : > { %1289 = vmatpush3.bf16.msra.mxu0 %v1433_v44 }
  0x61   : > { %1290 = vmatprep.subr.bf16.mxu0 %v1573_v0 }
  0x62   : > { %1271 = vmatpush3.bf16.msra.mxu1 %v1421_v30 }
  0x63   : > { %1296 = vmatprep.subr.bf16.mxu1 %v1573_v0 }
  0x64   : > { %1291 = vmatpush3.bf16.msra.mxu0 %v1435_v46 }
  0x65   : > { %1273 = vmatmul.mubr.msk.bf16.vlgmr.msra.gmra.mxu1 %vm371_vm2, %v589_v33  ;;  %1316 = vmatprep.subr.bf16.mxu0 %v1573_v0 }
  0x66   : > { %1312 = vmatprep.mubr.msk.bf16.mxu1 %vm1574_vm0, %v1573_v0  ;;  %1297 = vmatpush3.bf16.msra.mxu1 %v1426_v37  ;;  %v1174_v37 = vld [vmem:[%s1865_s6] ss:$0 sm:$0xff] }
  0x67   : > { %1298 = vmatprep.subr.bf16.mxu1 %v1573_v0 }
  0x6a   : > { %1299 = vmatpush3.bf16.msra.mxu1 %v1428_v39 }
  0x6b   : > { %1300 = vmatprep.subr.bf16.mxu1 %v1573_v0 }
  0x6e   : > { %1301 = vmatpush3.bf16.msra.mxu1 %v1430_v41 }
  0x6f   : > { %1302 = vmatprep.subr.bf16.mxu1 %v1573_v0 }
  0x72   : > { %1303 = vmatpush3.bf16.msra.mxu1 %v1432_v43 }
  0x73   : > { %1304 = vmatprep.subr.bf16.mxu1 %v1573_v0 }
  0x76   : > { %1305 = vmatpush3.bf16.msra.mxu1 %v1434_v45 }
  0x77   : > { %1306 = vmatprep.subr.bf16.mxu1 %v1573_v0 }
  0x7a   : > { %1307 = vmatpush3.bf16.msra.mxu1 %v1436_v47 }
  0x7b   : > { %1308 = vmatprep.subr.bf16.mxu1 %v1573_v0 }
  0x7e   : > { %1309 = vmatpush3.bf16.msra.mxu1 %v1438_v48 }
  0x7f   : > { %1310 = vmatprep.subr.bf16.mxu1 %v1573_v0 }
  0x82   : > { %1311 = vmatpush3.bf16.msra.mxu1 %v1440_v49 }
 0x105   : > { %v1786_v50 = vpop.f32.mrf.mxu1  ;;  %v566_v54 = vpop.f32.mrf.mxu0 }
 0x106   : > { %v410_v40 = vadd.f32 %v1124_v36, %v1786_v50 }
 0x107   : > { %v1238_v51 = vpop.f32.mrf.mxu1  ;;  %v1262_v55 = vpop.f32.mrf.mxu0 }
 0x109   : > { %v1788_v52 = vpop.f32.mrf.mxu1  ;;  %v569_v56 = vpop.f32.mrf.mxu0 }
 0x10a   : > { %v413_v47 = vadd.f32 %v1124_v36, %v1788_v52 }
 0x10b   : > { %v1239_v53 = vpop.f32.mrf.mxu1  ;;  %v1263_v57 = vpop.f32.mrf.mxu0 }
 0x115   : > { %v493_v58 = vpop.f32.mrf.mxu1 }
 0x116   : > { %v567_v62 = vadd.f32 %v566_v54, %v493_v58 }
 0x117   : > { %v1250_v59 = vpop.f32.mrf.mxu1 }
 0x119   : > { %v496_v60 = vpop.f32.mrf.mxu1 }
 0x11a   : > { %v570_v4 = vadd.f32 %v569_v56, %v496_v60 }
 0x11b   : > { %v1251_v61 = vpop.f32.mrf.mxu1 }
 0x125   : > { %v651_v63 = vpop.f32.mrf.mxu1 }
 0x126   : > { %v658_v2 = vadd.f32 %v651_v63, %v567_v62 }
 0x127   : > { %v1274_v3 = vpop.f32.mrf.mxu1 }
 0x128   : > { %v667_v5 = vadd.f32 %v1149_v1, %v658_v2 }
 0x129   : > { %v654_v6 = vpop.f32.mrf.mxu1 }
 0x12a   : > { %v669_v7 = vmax.f32 %v667_v5, 0.0  ;;  %v659_v8 = vadd.f32 %v654_v6, %v570_v4 }
 0x12b   : > { %v1275_v9 = vpop.f32.mrf.mxu1 }
 0x12c   : > { %673 = vst [vmem:[#allocation2 + $0x1] sm:$0xff] %v669_v7  ;;  %v668_v10 = vadd.f32 %v1149_v1, %v659_v8 }
 0x12e   : > { %v670_v11 = vmax.f32 %v668_v10, 0.0 }
 0x130   : > { %674 = vst [vmem:[#allocation2 + $0x9] sm:$0xff] %v670_v11  ;;  %v675_v13 = vpack.c.bf16 %v670_v11, %v669_v7 }
 0x132   : > { %1293 = vmatmul.mubr.bf16.vlgmr.msra.gmra.mxu0 %v675_v13 }
 0x133   : > { %1317 = vmatpush3.bf16.msra.mxu0 %v1437_v12  ;;  %1332 = vmatprep.mubr.msk.bf16.mxu0 %vm1574_vm0, %v1573_v0  ;;  %v676_v15 = vld [vmem:[#allocation2] sm:$0xff] }
 0x134   : > { %1318 = vmatprep.subr.bf16.mxu0 %v1573_v0 }
 0x137   : > { %1319 = vmatpush3.bf16.msra.mxu0 %v1439_v14  ;;  %v677_v16 = vld [vmem:[#allocation2 + $0x8] sm:$0xff] }
 0x138   : > { %1320 = vmatprep.subr.bf16.mxu0 %v1573_v0  ;;  %v678_v18 = vpack.c.bf16 %v677_v16, %v676_v15  ;;  %v890_v24 = vld [vmem:[#allocation2 + $0x2] sm:$0xff]  ;;  %v891_v25 = vld [vmem:[#allocation2 + $0xa] sm:$0xff] }
 0x139   : > { %v892_v26 = vpack.c.bf16 %v891_v25, %v890_v24 }
 0x13a   : > { %1313 = vmatmul.mubr.bf16.vlgmr.msra.gmra.mxu1 %v678_v18 }
 0x13b   : > { %1321 = vmatpush3.bf16.msra.mxu0 %v1441_v17 }
 0x13c   : > { %1322 = vmatprep.subr.bf16.mxu0 %v1573_v0 }
 0x13f   : > { %1323 = vmatpush3.bf16.msra.mxu0 %v1442_v19 }
 0x140   : > { %1324 = vmatprep.subr.bf16.mxu0 %v1573_v0 }
 0x143   : > { %1325 = vmatpush3.bf16.msra.mxu0 %v1443_v20 }
 0x144   : > { %1326 = vmatprep.subr.bf16.mxu0 %v1573_v0 }
 0x147   : > { %1327 = vmatpush3.bf16.msra.mxu0 %v1444_v21 }
 0x148   : > { %1328 = vmatprep.subr.bf16.mxu0 %v1573_v0 }
 0x14b   : > { %1329 = vmatpush3.bf16.msra.mxu0 %v1445_v22 }
 0x14c   : > { %1330 = vmatprep.subr.bf16.mxu0 %v1573_v0 }
 0x14f   : > { %1331 = vmatpush3.bf16.msra.mxu0 %v1446_v23 }
 0x152   : > { %1333 = vmatmul.mubr.bf16.vlgmr.msra.gmra.mxu0 %v892_v26 }
 0x1f2   : > { %v794_v27 = vpop.f32.mrf.mxu0 }
 0x1f4   : > { %v1294_v28 = vpop.f32.mrf.mxu0 }
 0x1f6   : > { %v797_v29 = vpop.f32.mrf.mxu0 }
 0x1f8   : > { %v1295_v30 = vpop.f32.mrf.mxu0 }
 0x1fa   : > { %v883_v31 = vpop.f32.mrf.mxu1 }
 0x1fb   : > { %v884_v35 = vadd.f32 %v883_v31, %v794_v27 }
 0x1fc   : > { %v1314_v32 = vpop.f32.mrf.mxu1 }
 0x1fe   : > { %v886_v33 = vpop.f32.mrf.mxu1 }
 0x1ff   : > { %v887_v41 = vadd.f32 %v886_v33, %v797_v29 }
 0x200   : > { %v1315_v34 = vpop.f32.mrf.mxu1 }
 0x212   : > { %v992_v0 = vpop.f32.mrf.mxu0 }
 0x213   : > { %v999_v38 = vadd.f32 %v992_v0, %v884_v35 }
 0x214   : > { %v1334_v39 = vpop.f32.mrf.mxu0 }
 0x215   : > { %v1008_v42 = vadd.f32 %v1174_v37, %v999_v38 }
 0x216   : > { %v995_v43 = vpop.f32.mrf.mxu0 }
 0x217   : > { %v1010_v44 = vadd.f32 %v1008_v42, %v410_v40  ;;  %v1000_v45 = vadd.f32 %v995_v43, %v887_v41 }
 0x218   : > { %v1335_v46 = vpop.f32.mrf.mxu0 }
 0x219   : > { %v1012_v48 = vmax.f32 %v1010_v44, 0.0  ;;  %v1009_v49 = vadd.f32 %v1174_v37, %v1000_v45 }
 0x21b   : > { %1014 = vst [vmem:[%s301_s20] sm:$0xff] %v1012_v48  ;;  %v1011_v51 = vadd.f32 %v1009_v49, %v413_v47 }
 0x21d   : > { %v1013_v50 = vmax.f32 %v1011_v51, 0.0 }
 0x21f   : > { %1015 = vst [vmem:[%s301_s20 + $0x8] sm:$0xff] %v1013_v50 }
 0x220   : > { %1512 = shalt.err (!%p1509_p3)
}
 0x221   : > { %s1513_s16 = scalar_lea.hbm %s1817_s8, 256  ;;  %s1517_s19 = scalar_lea.hbm %s1866_s7, 512 }
 0x222   : > { %p1514_p2 = scmp.ne.s32.totalorder %s1817_s8, %s1513_s16  ;;  %p1518_p7 = scmp.lt.s32.totalorder %s1817_s8, %s1866_s7 }
 0x223   : > { %p1519_p6 = scmp.lt.s32.totalorder %s1517_s19, %s1513_s16 }
 0x224   : > { %p1515_p4 = pnand %p1514_p2, %p1656_p5 }
 0x225   : > { %p1520_p9 = por %p1519_p6, %p1518_p7 }
 0x226   : > { %p1516_p13 = pneg %p1515_p4 }
 0x228   : > { %p1521_p10 = pnand %p1520_p9, %p1516_p13 }
 0x22a   : > { %1524 = shalt.err (!%p1521_p10)
}
 0x22b   : > { %s1576_s23 = smov 128   ;;  %s1577_s29 = smov 8  }
 0x22c   : > { %1345 = dma.vmem_to_hbm [thread:$0]  (%p1656_p5), %s1812_s21, 256, %s1817_s8, %s1819_s9, %s1576_s23, %s1576_s23, %s1577_s29  }
 0x22d PF: > { %p1362_p12 = scmp.ge.s32.totalorder %s1567_s27, 2  ;;  %s1045_s13 = sand.u32 1, %s1555_s24  }
 0x22e   : > { %p1876_p8 = scmp.ne.s32.totalorder %s1869_s12, 0  ;;  %s1046_s28 = scalar_lea.sflag [#allocation5], %s1045_s13 }
 0x230   : > { %p1355_p11 = pnand %p1362_p12, %p1876_p8 }
 0x232   : > { %p1356_p0 = pneg %p1355_p11 }
 0x234   : > { %1550 = dma.done.wait (%p1356_p0), %s1046_s28, 256  }
 0x235   : > { %1552 = vsyncadd (%p1356_p0), %s1046_s28, 4294967040  ;;  %p19_p1 = scmp.ge.s32.totalorder %s1643_s30, 4   ;;  %s1877_s24 = smov %s1559_s25 }
 0x236   : > { %s1878_s25 = smov %s1563_s26  ;;  %s1879_s26 = smov %s1654_s10 }
 0x237   : > { %s1880_s27 = smov %s1643_s30  ;;  %21 = sbr.rel (!%p19_p1) target bundleno = 5 (0x5), region = 96 }
 0x23c   :  { %1051 = vsyncpa [#allocation4], 1 }
 0x23d   :  { %1053 = vsyncpa [#allocation4 + $0x1], 1 }
 0x23e   :  { %1054 = vsyncpa [#allocation7], 1 }
 0x23f   :  { %1055 = vsyncpa [#allocation5], 1 }
 0x240   :  { %1057 = vsyncpa [#allocation5 + $0x1], 1 }

</bundles_post_ra>
